<compile_context>
chip_gen: v6e
topology: v6e:2x2x1
jax: 0.10.0
libtpu: 0.0.40
codegen_flags: <defaults>
</compile_context>

<pallas_src>
import jax
import jax.numpy as jnp
from jax import lax
from jax.experimental import pallas as pl
from jax.experimental.pallas import tpu as pltpu


D_IN, D_H1, D_H2, D_OUT = 28 * 28, 128, 64, 10


def _round_up(x, m):
    return (x + m - 1) // m * m


# Lane-dense padded dims.
K1P = _round_up(D_IN, 128)    # 896  (fc1 contraction)
H2P = _round_up(D_H2, 128)    # 128  (hidden-64 padded)
OUTP = _round_up(D_OUT, 128)  # 128  (output lanes padded)


def _mlp_kernel(x_ref, w1_ref, b1_ref, w2_ref, b2_ref, w3_ref, b3_ref, o_ref):
    # fc1 + ReLU  (low-precision operands, f32 MXU accumulation, f32 bias add)
    h1 = jnp.dot(x_ref[...], w1_ref[...],
                 preferred_element_type=jnp.float32) + b1_ref[...]
    h1 = jnp.maximum(h1, 0.0)

    # fc2 + ReLU  (hidden-64 padded to 128 lanes with zero weights/bias -> pad cols stay 0)
    h2 = jnp.dot(h1.astype(w2_ref.dtype), w2_ref[...],
                 preferred_element_type=jnp.float32) + b2_ref[...]
    h2 = jnp.maximum(h2, 0.0)

    # fc3  (output lanes padded to 128; only columns 0..D_OUT-1 are real logits)
    logits = jnp.dot(h2.astype(w3_ref.dtype), w3_ref[...],
                     preferred_element_type=jnp.float32) + b3_ref[...]

    # LogSoftmax over the D_OUT valid columns, numerically stable, in f32.
    col = lax.broadcasted_iota(jnp.int32, logits.shape, 1)
    valid = col < D_OUT
    masked = jnp.where(valid, logits, jnp.float32(-1e30))
    m = jnp.max(masked, axis=1, keepdims=True)
    shifted = masked - m
    e = jnp.where(valid, jnp.exp(shifted), 0.0)
    lse = jnp.log(jnp.sum(e, axis=1, keepdims=True))
    o_ref[...] = shifted - lse  # lane-dense (tile_b, 128) store; pad cols ~ -1e30


def simple_nn_forward(x, params, *, tile_b_max=512, compute_dtype=jnp.bfloat16):
    """x: (B, 1, 28, 28) or (B, 784) float32. Returns (B, 10) log-probabilities (f32)."""
    w1, b1, w2, b2, w3, b3 = params
    B = x.shape[0]
    x2d = x.reshape(B, -1).astype(jnp.float32)  # same element order as torch x.view(B, -1)
    assert x2d.shape[1] == D_IN

    # ---- pad feature dims to lane-dense multiples of 128, cast matmul operands ----
    xp = jnp.pad(x2d, ((0, 0), (0, K1P - D_IN))).astype(compute_dtype)
    w1p = jnp.pad(w1, ((0, K1P - D_IN), (0, 0))).astype(compute_dtype)
    b1p = b1.astype(jnp.float32)
    w2p = jnp.pad(w2, ((0, 0), (0, H2P - D_H2))).astype(compute_dtype)
    b2p = jnp.pad(b2, ((0, 0), (0, H2P - D_H2))).astype(jnp.float32)
    w3p = jnp.pad(w3, ((0, H2P - D_H2), (0, OUTP - D_OUT))).astype(compute_dtype)
    b3p = jnp.pad(b3, ((0, 0), (0, OUTP - D_OUT))).astype(jnp.float32)

    # ---- batch tiling: big tiles amortize per-step overhead; pad ragged batches ----
    tile_b = min(tile_b_max, _round_up(B, 16))  # multiple of 16 (bf16 sublane packing)
    B_pad = _round_up(B, tile_b)
    if B_pad != B:
        xp = jnp.pad(xp, ((0, B_pad - B), (0, 0)))

    grid = (B_pad // tile_b,)
    full = lambda i: (0, 0)  # weights/biases: constant block -> stay resident in VMEM

    out = pl.pallas_call(
        _mlp_kernel,
        out_shape=jax.ShapeDtypeStruct((B_pad, OUTP), jnp.float32),
        grid_spec=pltpu.PrefetchScalarGridSpec(
            num_scalar_prefetch=0,
            grid=grid,
            in_specs=[
                pl.BlockSpec((tile_b, K1P), lambda i: (i, 0)),
                pl.BlockSpec((K1P, D_H1), full),
                pl.BlockSpec((1, D_H1), full),
                pl.BlockSpec((D_H1, H2P), full),
                pl.BlockSpec((1, H2P), full),
                pl.BlockSpec((H2P, OUTP), full),
                pl.BlockSpec((1, OUTP), full),
            ],
            out_specs=pl.BlockSpec((tile_b, OUTP), lambda i: (i, 0)),
        ),
        compiler_params=pltpu.CompilerParams(
            dimension_semantics=("parallel",),      # batch axis shards across TCs (v7x)
            vmem_limit_bytes=32 * 1024 * 1024,      # headroom for large tiles on v5e
        ),
    )(xp, w1p, b1p, w2p, b2p, w3p, b3p)

    return out[:B, :D_OUT]


def init_params(key):
    """Deterministic init mirroring nn.Linear default U(-1/sqrt(fan_in), 1/sqrt(fan_in)).

    Weights are stored as (in, out) — i.e. already transposed relative to PyTorch's
    (out, in) — so the kernel can compute x @ W directly."""
    ks = jax.random.split(key, 6)

    def linear(kw, kb, fan_in, fan_out):
        bound = 1.0 / jnp.sqrt(jnp.float32(fan_in))
        w = jax.random.uniform(kw, (fan_in, fan_out), jnp.float32, -bound, bound)
        b = jax.random.uniform(kb, (1, fan_out), jnp.float32, -bound, bound)
        return w, b

    w1, b1 = linear(ks[0], ks[1], D_IN, D_H1)
    w2, b2 = linear(ks[2], ks[3], D_H1, D_H2)
    w3, b3 = linear(ks[4], ks[5], D_H2, D_OUT)
    return (w1, b1, w2, b2, w3, b3)


def _reference(x, params):
    """Pure-JAX f32 reference replicating the PyTorch forward."""
    w1, b1, w2, b2, w3, b3 = params
    h = x.reshape(x.shape[0], -1)
    h = jnp.maximum(h @ w1 + b1, 0.0)
    h = jnp.maximum(h @ w2 + b2, 0.0)
    logits = h @ w3 + b3
    return jax.nn.log_softmax(logits, axis=1)


if __name__ == "__main__":
    key = jax.random.PRNGKey(0)
    k_params, k_x = jax.random.split(key)

    params = init_params(k_params)
    # Input consistent with the module's implied shape: MNIST-like (B, 1, 28, 28).
    B = 2
    x = jax.random.normal(k_x, (B, 1, 28, 28), jnp.float32)

    ref = _reference(x, params)

    # f32 path: exact structural check against the reference.
    out_f32 = jax.block_until_ready(
        simple_nn_forward(x, params, compute_dtype=jnp.float32))
    assert out_f32.shape == (B, D_OUT)
    assert jnp.allclose(out_f32, ref, atol=1e-5, rtol=1e-5), "f32 mismatch vs reference"

    # Default bf16 path: fast path, loose tolerance vs the f32 reference.
    out = jax.block_until_ready(simple_nn_forward(x, params))
    assert out.shape == (B, D_OUT)
    assert jnp.allclose(out, ref, atol=3e-2, rtol=3e-2), "bf16 mismatch vs reference"
    # log-softmax rows should sum (in prob space) to ~1
    assert jnp.allclose(jnp.sum(jnp.exp(out), axis=1), 1.0, atol=1e-3)

    print("KERNEL_OK")
</pallas_src>

<mosaic_0001>
module attributes {stable_mosaic.version = 11 : i64} {
  func.func @_mlp_kernel(%arg0: i32, %arg1: memref<16x896xf32, #tpu.memory_space<vmem>>, %arg2: memref<896x128xf32, #tpu.memory_space<vmem>>, %arg3: memref<1x128xf32, #tpu.memory_space<vmem>>, %arg4: memref<128x128xf32, #tpu.memory_space<vmem>>, %arg5: memref<1x128xf32, #tpu.memory_space<vmem>>, %arg6: memref<128x128xf32, #tpu.memory_space<vmem>>, %arg7: memref<1x128xf32, #tpu.memory_space<vmem>>, %arg8: memref<16x128xf32, #tpu.memory_space<vmem>>) attributes {dimension_semantics = [#tpu.dimension_semantics<parallel>], iteration_bounds = array<i64: 1>, scalar_prefetch = 0 : i64, scratch_operands = 0 : i64, tpu.core_type = #tpu.core_type<tc>, window_params = [{transform_indices = @transform_0, window_bounds = array<i64: 16, 896>}, {pipeline_mode = #tpu.pipeline_mode<synchronous>, transform_indices = @transform_1, window_bounds = array<i64: 896, 128>}, {pipeline_mode = #tpu.pipeline_mode<synchronous>, transform_indices = @transform_2, window_bounds = array<i64: 1, 128>}, {pipeline_mode = #tpu.pipeline_mode<synchronous>, transform_indices = @transform_3, window_bounds = array<i64: 128, 128>}, {pipeline_mode = #tpu.pipeline_mode<synchronous>, transform_indices = @transform_4, window_bounds = array<i64: 1, 128>}, {pipeline_mode = #tpu.pipeline_mode<synchronous>, transform_indices = @transform_5, window_bounds = array<i64: 128, 128>}, {pipeline_mode = #tpu.pipeline_mode<synchronous>, transform_indices = @transform_6, window_bounds = array<i64: 1, 128>}, {transform_indices = @transform_7, window_bounds = array<i64: 16, 128>}]} {
    %c0 = arith.constant 0 : index
    %c0_0 = arith.constant 0 : index
    %0 = vector.load %arg1[%c0, %c0_0] : memref<16x896xf32, #tpu.memory_space<vmem>>, vector<16x896xf32>
    %c0_1 = arith.constant 0 : index
    %c0_2 = arith.constant 0 : index
    %1 = vector.load %arg2[%c0_1, %c0_2] : memref<896x128xf32, #tpu.memory_space<vmem>>, vector<896x128xf32>
    %cst = arith.constant dense<0.000000e+00> : vector<16x128xf32>
    %2 = tpu.matmul %0, %1, %cst {dimension_numbers = #tpu.dot_dimension_numbers<[1], [0], [0], [1], [0, 0, 1, 1], [], []>} : vector<16x896xf32>, vector<896x128xf32>, vector<16x128xf32> -> vector<16x128xf32>
    %c0_3 = arith.constant 0 : index
    %c0_4 = arith.constant 0 : index
    %3 = vector.load %arg3[%c0_3, %c0_4] : memref<1x128xf32, #tpu.memory_space<vmem>>, vector<1x128xf32>
    %4 = vector.broadcast %3 : vector<1x128xf32> to vector<16x128xf32>
    %5 = arith.addf %2, %4 : vector<16x128xf32>
    %cst_5 = arith.constant 0.000000e+00 : f32
    %6 = vector.broadcast %cst_5 : f32 to vector<16x128xf32>
    %7 = arith.maximumf %5, %6 : vector<16x128xf32>
    %c0_6 = arith.constant 0 : index
    %c0_7 = arith.constant 0 : index
    %8 = vector.load %arg4[%c0_6, %c0_7] : memref<128x128xf32, #tpu.memory_space<vmem>>, vector<128x128xf32>
    %cst_8 = arith.constant dense<0.000000e+00> : vector<16x128xf32>
    %9 = tpu.matmul %7, %8, %cst_8 {dimension_numbers = #tpu.dot_dimension_numbers<[1], [0], [0], [1], [0, 0, 1, 1], [], []>} : vector<16x128xf32>, vector<128x128xf32>, vector<16x128xf32> -> vector<16x128xf32>
    %c0_9 = arith.constant 0 : index
    %c0_10 = arith.constant 0 : index
    %10 = vector.load %arg5[%c0_9, %c0_10] : memref<1x128xf32, #tpu.memory_space<vmem>>, vector<1x128xf32>
    %11 = vector.broadcast %10 : vector<1x128xf32> to vector<16x128xf32>
    %12 = arith.addf %9, %11 : vector<16x128xf32>
    %cst_11 = arith.constant 0.000000e+00 : f32
    %13 = vector.broadcast %cst_11 : f32 to vector<16x128xf32>
    %14 = arith.maximumf %12, %13 : vector<16x128xf32>
    %c0_12 = arith.constant 0 : index
    %c0_13 = arith.constant 0 : index
    %15 = vector.load %arg6[%c0_12, %c0_13] : memref<128x128xf32, #tpu.memory_space<vmem>>, vector<128x128xf32>
    %cst_14 = arith.constant dense<0.000000e+00> : vector<16x128xf32>
    %16 = tpu.matmul %14, %15, %cst_14 {dimension_numbers = #tpu.dot_dimension_numbers<[1], [0], [0], [1], [0, 0, 1, 1], [], []>} : vector<16x128xf32>, vector<128x128xf32>, vector<16x128xf32> -> vector<16x128xf32>
    %c0_15 = arith.constant 0 : index
    %c0_16 = arith.constant 0 : index
    %17 = vector.load %arg7[%c0_15, %c0_16] : memref<1x128xf32, #tpu.memory_space<vmem>>, vector<1x128xf32>
    %18 = vector.broadcast %17 : vector<1x128xf32> to vector<16x128xf32>
    %19 = arith.addf %16, %18 : vector<16x128xf32>
    %20 = tpu.iota {dimensions = array<i32: 1>} : vector<16x128xi32>
    %c10_i32 = arith.constant 10 : i32
    %21 = vector.broadcast %c10_i32 : i32 to vector<16x128xi32>
    %22 = arith.cmpi slt, %20, %21 : vector<16x128xi32>
    %cst_17 = arith.constant -1.000000e+30 : f32
    %23 = vector.broadcast %cst_17 : f32 to vector<16x128xf32>
    %24 = arith.select %22, %19, %23 : vector<16x128xi1>, vector<16x128xf32>
    %cst_18 = arith.constant dense<0xFF800000> : vector<16xf32>
    %25 = vector.multi_reduction <maximumf>, %24, %cst_18 [1] : vector<16x128xf32> to vector<16xf32>
    %26 = vector.shape_cast %25 : vector<16xf32> to vector<16x1xf32>
    %27 = vector.broadcast %26 : vector<16x1xf32> to vector<16x128xf32>
    %28 = arith.subf %24, %27 : vector<16x128xf32>
    %29 = math.exp %28 : vector<16x128xf32>
    %cst_19 = arith.constant 0.000000e+00 : f32
    %30 = vector.broadcast %cst_19 : f32 to vector<16x128xf32>
    %31 = arith.select %22, %29, %30 : vector<16x128xi1>, vector<16x128xf32>
    %cst_20 = arith.constant dense<0.000000e+00> : vector<16xf32>
    %32 = vector.multi_reduction <add>, %31, %cst_20 [1] : vector<16x128xf32> to vector<16xf32>
    %33 = vector.shape_cast %32 : vector<16xf32> to vector<16x1xf32>
    %34 = math.log %33 : vector<16x1xf32>
    %35 = vector.broadcast %34 : vector<16x1xf32> to vector<16x128xf32>
    %36 = arith.subf %28, %35 : vector<16x128xf32>
    %c0_21 = arith.constant 0 : index
    %c0_22 = arith.constant 0 : index
    %37 = vector.load %arg8[%c0_21, %c0_22] : memref<16x128xf32, #tpu.memory_space<vmem>>, vector<16x128xf32>
    tpu.vector_store %arg8[%c0_21, %c0_22], %36 {strides = array<i32>} : memref<16x128xf32, #tpu.memory_space<vmem>>, vector<16x128xf32>,
    return
  }
  func.func @transform_0(%arg0: i32) -> (i32, i32) {
    %c0_i32 = arith.constant 0 : i32
    %c0_i32_0 = arith.constant 0 : i32
    return %arg0, %c0_i32 : i32, i32
  }
  func.func @transform_1(%arg0: i32) -> (i32, i32) {
    %c0_i32 = arith.constant 0 : i32
    %c0_i32_0 = arith.constant 0 : i32
    %c0_i32_1 = arith.constant 0 : i32
    return %c0_i32, %c0_i32_0 : i32, i32
  }
  func.func @transform_2(%arg0: i32) -> (i32, i32) {
    %c0_i32 = arith.constant 0 : i32
    %c0_i32_0 = arith.constant 0 : i32
    %c0_i32_1 = arith.constant 0 : i32
    return %c0_i32, %c0_i32_0 : i32, i32
  }
  func.func @transform_3(%arg0: i32) -> (i32, i32) {
    %c0_i32 = arith.constant 0 : i32
    %c0_i32_0 = arith.constant 0 : i32
    %c0_i32_1 = arith.constant 0 : i32
    return %c0_i32, %c0_i32_0 : i32, i32
  }
  func.func @transform_4(%arg0: i32) -> (i32, i32) {
    %c0_i32 = arith.constant 0 : i32
    %c0_i32_0 = arith.constant 0 : i32
    %c0_i32_1 = arith.constant 0 : i32
    return %c0_i32, %c0_i32_0 : i32, i32
  }
  func.func @transform_5(%arg0: i32) -> (i32, i32) {
    %c0_i32 = arith.constant 0 : i32
    %c0_i32_0 = arith.constant 0 : i32
    %c0_i32_1 = arith.constant 0 : i32
    return %c0_i32, %c0_i32_0 : i32, i32
  }
  func.func @transform_6(%arg0: i32) -> (i32, i32) {
    %c0_i32 = arith.constant 0 : i32
    %c0_i32_0 = arith.constant 0 : i32
    %c0_i32_1 = arith.constant 0 : i32
    return %c0_i32, %c0_i32_0 : i32, i32
  }
  func.func @transform_7(%arg0: i32) -> (i32, i32) {
    %c0_i32 = arith.constant 0 : i32
    %c0_i32_0 = arith.constant 0 : i32
    return %arg0, %c0_i32 : i32, i32
  }
}

</mosaic_0001>

<bundles_post_ra>
// kernel: tpu_custom_call.1
= control target key start
LH: loop header
LB: loop body
LE: loop exit
PB: predicated region body
PF: predicated region fallthrough
CT: control target
= control target key end

     0   :  { %12 = vsyncpa [#allocation3], 0  ;;  %s1253_s0 = inlined_call_operand.hbm [shape: f32[16,896], index: 0, kind: input, shape index: {}]   ;;  %s1254_s1 = inlined_call_operand.hbm [shape: f32[896,128], index: 1, kind: input, shape index: {}]   ;;  %s1255_s2 = inlined_call_operand.vmem [shape: f32[1,128], index: 2, kind: input, shape index: {}]   ;;  %s1256_s3 = inlined_call_operand.hbm [shape: f32[128,128], index: 3, kind: input, shape index: {}]   ;;  %s1257_s4 = inlined_call_operand.vmem [shape: f32[1,128], index: 4, kind: input, shape index: {}]   ;;  %s1258_s5 = inlined_call_operand.hbm [shape: f32[128,128], index: 5, kind: input, shape index: {}]   ;;  %s1259_s6 = inlined_call_operand.vmem [shape: f32[1,128], index: 6, kind: input, shape index: {}]   ;;  %s1260_s7 = inlined_call_operand.hbm [shape: f32[16,128], index: 7, kind: output, shape index: {}]  }
   0x1   :  { %13 = vsyncpa [#allocation6], 0 }
   0x2   :  { %14 = vsyncpa [#allocation9], 0 }
   0x3   :  { %15 = vsyncpa [#allocation4], 0  ;;  %s1164_s24 = smov [#allocation5]  }
   0x4   :  { %s33_s25 = sshll.u32 %s1164_s24, 4  ;;  %s34_s25 = int_to_ptr.vmem [resolvable:$true] %s33_s25 }
   0x5   :  { %s1064_s26 = scalar_lea.vmem %s34_s25, 14336  ;;  %p1069_p1 = scmp.lt.s32.totalorder %s34_s25, %s34_s25 }
   0x6   :  { %p1065_p0 = scmp.ne.s32.totalorder %s34_s25, %s1064_s26  ;;  %p1070_p2 = scmp.lt.s32.totalorder %s1064_s26, %s1064_s26 }
   0x8   :  { %p1071_p3 = por %p1070_p2, %p1069_p1 }
   0xa   :  { %p1072_p4 = pnand %p1071_p3, %p1065_p0 }
   0xc   :  { %1075 = shalt.err (!%p1072_p4)
}
   0xd   :  { %s1165_s27 = smov 128   ;;  %s1166_s28 = smov 8  }
   0xe   :  { %39 = dma.hbm_to_vmem [thread:$0]  %s1254_s1, 14336, %s34_s25, [#allocation6], %s1165_s27, %s1165_s27, %s1166_s28  }
   0xf   :  { %s1167_s8 = smov [#allocation2]  }
  0x10   :  { %s21_s9 = sshll.u32 %s1167_s8, 4  ;;  %s22_s9 = int_to_ptr.vmem [resolvable:$true] %s21_s9 }
  0x11   :  { %s1084_s10 = scalar_lea.vmem %s22_s9, 1792  ;;  %p1089_p6 = scmp.lt.s32.totalorder %s22_s9, %s22_s9 }
  0x12   :  { %p1085_p5 = scmp.ne.s32.totalorder %s22_s9, %s1084_s10  ;;  %p1090_p7 = scmp.lt.s32.totalorder %s1084_s10, %s1084_s10 }
  0x14   :  { %p1091_p8 = por %p1090_p7, %p1089_p6 }
  0x16   :  { %p1092_p9 = pnand %p1091_p8, %p1085_p5 }
  0x18   :  { %1095 = shalt.err (!%p1092_p9)
}
  0x19   :  { %s1168_s11 = smov 896   ;;  %s1169_s12 = smov 56  }
  0x1a   :  { %27 = dma.hbm_to_vmem [thread:$0]  %s1253_s0, 1792, %s22_s9, [#allocation3], %s1168_s11, %s1168_s11, %s1169_s12  }
  0x1b   :  { %s1170_s15 = smov [#allocation7]   ;;  %s1171_s17 = smov [#allocation8]  }
  0x1c   :  { %s47_s16 = sshll.u32 %s1170_s15, 4  ;;  %s61_s1 = sshll.u32 %s1171_s17, 4  ;;  %s48_s16 = int_to_ptr.vmem [resolvable:$true] %s47_s16  ;;  %s62_s1 = int_to_ptr.vmem [resolvable:$true] %s61_s1 }
  0x1d   :  { %s1104_s18 = scalar_lea.vmem %s48_s16, 2048  ;;  %p1109_p11 = scmp.lt.s32.totalorder %s48_s16, %s48_s16 }
  0x1e   :  { %p1105_p10 = scmp.ne.s32.totalorder %s48_s16, %s1104_s18  ;;  %p1110_p12 = scmp.lt.s32.totalorder %s1104_s18, %s1104_s18 }
  0x20   :  { %p1111_p13 = por %p1110_p12, %p1109_p11 }
  0x22   :  { %p1112_p0 = pnand %p1111_p13, %p1105_p10 }
  0x24   :  { %1115 = shalt.err (!%p1112_p0)
}
  0x25   :  { %53 = dma.hbm_to_vmem [thread:$0]  %s1256_s3, 2048, %s48_s16, [#allocation6], %s1165_s27, %s1165_s27, %s1166_s28  }
  0x26   :  { %s1124_s0 = scalar_lea.vmem %s62_s1, 2048  ;;  %p1129_p2 = scmp.lt.s32.totalorder %s62_s1, %s62_s1 }
  0x27   :  { %p1125_p1 = scmp.ne.s32.totalorder %s62_s1, %s1124_s0  ;;  %p1130_p3 = scmp.lt.s32.totalorder %s1124_s0, %s1124_s0 }
  0x29   :  { %p1131_p4 = por %p1130_p3, %p1129_p2 }
  0x2b   :  { %p1132_p5 = pnand %p1131_p4, %p1125_p1 }
  0x2d   :  { %1135 = shalt.err (!%p1132_p5)
}
  0x2e   :  { %67 = dma.hbm_to_vmem [thread:$0]  %s1258_s5, 2048, %s62_s1, [#allocation9], %s1165_s27, %s1165_s27, %s1166_s28  }
  0x2f   :  { %1156 = dma.done.wait [#allocation3], 1792  }
  0x30   :  { %1157 = vsyncadd [#allocation3], 4294965504 }
  0x31   :  { %1158 = dma.done.wait [#allocation6], 16384  }
  0x32   :  { %1159 = vsyncadd [#allocation6], 4294950912 }
  0x33   :  { %1160 = dma.done.wait [#allocation9], 2048  }
  0x34   :  { %1161 = vsyncadd [#allocation9], 4294965248  ;;  %v127_v0 = vld [vmem:[#allocation5 + $0xf8] sm:$0xff]  ;;  %v126_v2 = vld [vmem:[#allocation5 + $0xf0] sm:$0xff] }
  0x35   :  { %v111_v1 = vld [vmem:[#allocation5 + $0x78] sm:$0xff]  ;;  %766 = vmatprep.subr.mxu0 %v127_v0  ;;  %v110_v4 = vld [vmem:[#allocation5 + $0x70] sm:$0xff]  ;;  %v125_v6 = vld [vmem:[#allocation5 + $0xe8] sm:$0xff] }
  0x36   :  { %v159_v3 = vld [vmem:[#allocation5 + $0x1f8] sm:$0xff]  ;;  %767 = vmatpush3.msra.mxu0 %v111_v1  ;;  %v158_v7 = vld [vmem:[#allocation5 + $0x1f0] sm:$0xff]  ;;  %v109_v8 = vld [vmem:[#allocation5 + $0x68] sm:$0xff] }
  0x37   :  { %v143_v5 = vld [vmem:[#allocation5 + $0x178] sm:$0xff]  ;;  %804 = vmatprep.subr.mxu1 %v159_v3  ;;  %768 = vmatprep.subr.mxu0 %v126_v2  ;;  %v142_v9 = vld [vmem:[#allocation5 + $0x170] sm:$0xff]  ;;  %v157_v10 = vld [vmem:[#allocation5 + $0x1e8] sm:$0xff] }
  0x38   :  { %805 = vmatpush3.msra.mxu1 %v143_v5  ;;  %769 = vmatpush3.msra.mxu0 %v110_v4  ;;  %v124_v11 = vld [vmem:[#allocation5 + $0xe0] sm:$0xff]  ;;  %v141_v12 = vld [vmem:[#allocation5 + $0x168] sm:$0xff]  ;;  %v123_v15 = vld [vmem:[#allocation5 + $0xd8] sm:$0xff] }
  0x39   :  { %806 = vmatprep.subr.mxu1 %v158_v7  ;;  %770 = vmatprep.subr.mxu0 %v125_v6  ;;  %v108_v13 = vld [vmem:[#allocation5 + $0x60] sm:$0xff]  ;;  %v107_v17 = vld [vmem:[#allocation5 + $0x58] sm:$0xff]  ;;  %v122_v19 = vld [vmem:[#allocation5 + $0xd0] sm:$0xff] }
  0x3a   :  { %807 = vmatpush3.msra.mxu1 %v142_v9  ;;  %v156_v14 = vld [vmem:[#allocation5 + $0x1e0] sm:$0xff]  ;;  %771 = vmatpush3.msra.mxu0 %v109_v8  ;;  %v155_v18 = vld [vmem:[#allocation5 + $0x1d8] sm:$0xff]  ;;  %v106_v21 = vld [vmem:[#allocation5 + $0x50] sm:$0xff] }
  0x3b   :  { %808 = vmatprep.subr.mxu1 %v157_v10  ;;  %v140_v16 = vld [vmem:[#allocation5 + $0x160] sm:$0xff]  ;;  %772 = vmatprep.subr.mxu0 %v124_v11  ;;  %v139_v20 = vld [vmem:[#allocation5 + $0x158] sm:$0xff]  ;;  %v154_v22 = vld [vmem:[#allocation5 + $0x1d0] sm:$0xff] }
  0x3c   :  { %809 = vmatpush3.msra.mxu1 %v141_v12  ;;  %773 = vmatpush3.msra.mxu0 %v108_v13  ;;  %v121_v23 = vld [vmem:[#allocation5 + $0xc8] sm:$0xff]  ;;  %v138_v24 = vld [vmem:[#allocation5 + $0x150] sm:$0xff]  ;;  %v120_v27 = vld [vmem:[#allocation5 + $0xc0] sm:$0xff] }
  0x3d   :  { %810 = vmatprep.subr.mxu1 %v156_v14  ;;  %774 = vmatprep.subr.mxu0 %v123_v15  ;;  %v105_v25 = vld [vmem:[#allocation5 + $0x48] sm:$0xff]  ;;  %v104_v29 = vld [vmem:[#allocation5 + $0x40] sm:$0xff]  ;;  %v119_v31 = vld [vmem:[#allocation5 + $0xb8] sm:$0xff] }
  0x3e   :  { %811 = vmatpush3.msra.mxu1 %v140_v16  ;;  %775 = vmatpush3.msra.mxu0 %v107_v17  ;;  %v153_v26 = vld [vmem:[#allocation5 + $0x1c8] sm:$0xff]  ;;  %v152_v30 = vld [vmem:[#allocation5 + $0x1c0] sm:$0xff]  ;;  %v103_v33 = vld [vmem:[#allocation5 + $0x38] sm:$0xff] }
  0x3f   :  { %812 = vmatprep.subr.mxu1 %v155_v18  ;;  %776 = vmatprep.subr.mxu0 %v122_v19  ;;  %v137_v28 = vld [vmem:[#allocation5 + $0x148] sm:$0xff]  ;;  %v136_v32 = vld [vmem:[#allocation5 + $0x140] sm:$0xff]  ;;  %v151_v34 = vld [vmem:[#allocation5 + $0x1b8] sm:$0xff] }
  0x40   :  { %813 = vmatpush3.msra.mxu1 %v139_v20  ;;  %777 = vmatpush3.msra.mxu0 %v106_v21  ;;  %v118_v35 = vld [vmem:[#allocation5 + $0xb0] sm:$0xff]  ;;  %v135_v36 = vld [vmem:[#allocation5 + $0x138] sm:$0xff]  ;;  %v117_v39 = vld [vmem:[#allocation5 + $0xa8] sm:$0xff] }
  0x41   :  { %814 = vmatprep.subr.mxu1 %v154_v22  ;;  %778 = vmatprep.subr.mxu0 %v121_v23  ;;  %v102_v37 = vld [vmem:[#allocation5 + $0x30] sm:$0xff]  ;;  %v101_v41 = vld [vmem:[#allocation5 + $0x28] sm:$0xff]  ;;  %v116_v43 = vld [vmem:[#allocation5 + $0xa0] sm:$0xff] }
  0x42   :  { %815 = vmatpush3.msra.mxu1 %v138_v24  ;;  %779 = vmatpush3.msra.mxu0 %v105_v25  ;;  %v150_v38 = vld [vmem:[#allocation5 + $0x1b0] sm:$0xff]  ;;  %v149_v42 = vld [vmem:[#allocation5 + $0x1a8] sm:$0xff]  ;;  %v100_v45 = vld [vmem:[#allocation5 + $0x20] sm:$0xff] }
  0x43   :  { %816 = vmatprep.subr.mxu1 %v153_v26  ;;  %780 = vmatprep.subr.mxu0 %v120_v27  ;;  %v134_v40 = vld [vmem:[#allocation5 + $0x130] sm:$0xff]  ;;  %v133_v44 = vld [vmem:[#allocation5 + $0x128] sm:$0xff]  ;;  %v148_v46 = vld [vmem:[#allocation5 + $0x1a0] sm:$0xff] }
  0x44   :  { %817 = vmatpush3.msra.mxu1 %v137_v28  ;;  %781 = vmatpush3.msra.mxu0 %v104_v29  ;;  %v115_v47 = vld [vmem:[#allocation5 + $0x98] sm:$0xff]  ;;  %v132_v48 = vld [vmem:[#allocation5 + $0x120] sm:$0xff]  ;;  %v114_v51 = vld [vmem:[#allocation5 + $0x90] sm:$0xff] }
  0x45   :  { %818 = vmatprep.subr.mxu1 %v152_v30  ;;  %782 = vmatprep.subr.mxu0 %v119_v31  ;;  %v99_v49 = vld [vmem:[#allocation5 + $0x18] sm:$0xff]  ;;  %v98_v53 = vld [vmem:[#allocation5 + $0x10] sm:$0xff]  ;;  %v113_v55 = vld [vmem:[#allocation5 + $0x88] sm:$0xff] }
  0x46   :  { %819 = vmatpush3.msra.mxu1 %v136_v32  ;;  %783 = vmatpush3.msra.mxu0 %v103_v33  ;;  %v147_v50 = vld [vmem:[#allocation5 + $0x198] sm:$0xff]  ;;  %v146_v54 = vld [vmem:[#allocation5 + $0x190] sm:$0xff]  ;;  %v97_v57 = vld [vmem:[#allocation5 + $0x8] sm:$0xff] }
  0x47   :  { %820 = vmatprep.subr.mxu1 %v151_v34  ;;  %784 = vmatprep.subr.mxu0 %v118_v35  ;;  %v131_v52 = vld [vmem:[#allocation5 + $0x118] sm:$0xff]  ;;  %v130_v56 = vld [vmem:[#allocation5 + $0x110] sm:$0xff]  ;;  %v145_v58 = vld [vmem:[#allocation5 + $0x188] sm:$0xff] }
  0x48   :  { %821 = vmatpush3.msra.mxu1 %v135_v36  ;;  %785 = vmatpush3.msra.mxu0 %v102_v37  ;;  %v112_v59 = vld [vmem:[#allocation5 + $0x80] sm:$0xff]  ;;  %v83_v60 = vld [vmem:[#allocation2 + $0x8] sm:$0xff]  ;;  %v129_v62 = vld [vmem:[#allocation5 + $0x108] sm:$0xff] }
  0x49   :  { %822 = vmatprep.subr.mxu1 %v150_v38  ;;  %786 = vmatprep.subr.mxu0 %v117_v39  ;;  %v96_v61 = vld [vmem:[#allocation5] sm:$0xff]  ;;  %v82_v63 = vld [vmem:[#allocation2] sm:$0xff]  ;;  %v191_v1 = vld [vmem:[#allocation5 + $0x2f8] sm:$0xff] }
  0x4a   :  { %823 = vmatpush3.msra.mxu1 %v134_v40  ;;  %787 = vmatpush3.msra.mxu0 %v101_v41  ;;  %v144_v0 = vld [vmem:[#allocation5 + $0x180] sm:$0xff]  ;;  %v85_v3 = vld [vmem:[#allocation2 + $0x18] sm:$0xff]  ;;  %v175_v4 = vld [vmem:[#allocation5 + $0x278] sm:$0xff] }
  0x4b   :  { %824 = vmatprep.subr.mxu1 %v149_v42  ;;  %788 = vmatprep.subr.mxu0 %v116_v43  ;;  %v128_v2 = vld [vmem:[#allocation5 + $0x100] sm:$0xff]  ;;  %v190_v6 = vld [vmem:[#allocation5 + $0x2f0] sm:$0xff]  ;;  %v207_v8 = vld [vmem:[#allocation5 + $0x378] sm:$0xff] }
  0x4c   :  { %825 = vmatpush3.msra.mxu1 %v133_v44  ;;  %789 = vmatpush3.msra.mxu0 %v100_v45  ;;  %v84_v5 = vld [vmem:[#allocation2 + $0x10] sm:$0xff]  ;;  %v174_v7 = vld [vmem:[#allocation5 + $0x270] sm:$0xff]  ;;  %v189_v9 = vld [vmem:[#allocation5 + $0x2e8] sm:$0xff] }
  0x4d   :  { %826 = vmatprep.subr.mxu1 %v148_v46  ;;  %790 = vmatprep.subr.mxu0 %v115_v47  ;;  %v173_v10 = vld [vmem:[#allocation5 + $0x268] sm:$0xff]  ;;  %v206_v11 = vld [vmem:[#allocation5 + $0x370] sm:$0xff]  ;;  %v188_v12 = vld [vmem:[#allocation5 + $0x2e0] sm:$0xff] }
  0x4e   :  { %827 = vmatpush3.msra.mxu1 %v132_v48  ;;  %791 = vmatpush3.msra.mxu0 %v99_v49  ;;  %v172_v13 = vld [vmem:[#allocation5 + $0x260] sm:$0xff]  ;;  %v205_v14 = vld [vmem:[#allocation5 + $0x368] sm:$0xff]  ;;  %v187_v15 = vld [vmem:[#allocation5 + $0x2d8] sm:$0xff] }
  0x4f   :  { %828 = vmatprep.subr.mxu1 %v147_v50  ;;  %792 = vmatprep.subr.mxu0 %v114_v51  ;;  %v171_v16 = vld [vmem:[#allocation5 + $0x258] sm:$0xff]  ;;  %v204_v17 = vld [vmem:[#allocation5 + $0x360] sm:$0xff]  ;;  %v186_v18 = vld [vmem:[#allocation5 + $0x2d0] sm:$0xff] }
  0x50   :  { %829 = vmatpush3.msra.mxu1 %v131_v52  ;;  %793 = vmatpush3.msra.mxu0 %v98_v53  ;;  %v170_v19 = vld [vmem:[#allocation5 + $0x250] sm:$0xff]  ;;  %v203_v20 = vld [vmem:[#allocation5 + $0x358] sm:$0xff]  ;;  %v185_v21 = vld [vmem:[#allocation5 + $0x2c8] sm:$0xff] }
  0x51   :  { %830 = vmatprep.subr.mxu1 %v146_v54  ;;  %794 = vmatprep.subr.mxu0 %v113_v55  ;;  %v169_v22 = vld [vmem:[#allocation5 + $0x248] sm:$0xff]  ;;  %v202_v23 = vld [vmem:[#allocation5 + $0x350] sm:$0xff]  ;;  %v184_v24 = vld [vmem:[#allocation5 + $0x2c0] sm:$0xff] }
  0x52   :  { %831 = vmatpush3.msra.mxu1 %v130_v56  ;;  %795 = vmatpush3.msra.mxu0 %v97_v57  ;;  %v168_v25 = vld [vmem:[#allocation5 + $0x240] sm:$0xff]  ;;  %v201_v26 = vld [vmem:[#allocation5 + $0x348] sm:$0xff]  ;;  %v183_v27 = vld [vmem:[#allocation5 + $0x2b8] sm:$0xff] }
  0x53   :  { %832 = vmatprep.subr.mxu1 %v145_v58  ;;  %796 = vmatprep.subr.mxu0 %v112_v59  ;;  %v167_v28 = vld [vmem:[#allocation5 + $0x238] sm:$0xff]  ;;  %v200_v29 = vld [vmem:[#allocation5 + $0x340] sm:$0xff]  ;;  %v182_v30 = vld [vmem:[#allocation5 + $0x2b0] sm:$0xff] }
  0x54   :  { %279 = vmatprep.mubr.f32.mxu0 %v83_v60  ;;  %797 = vmatpush3.msra.mxu0 %v96_v61  ;;  %v166_v31 = vld [vmem:[#allocation5 + $0x230] sm:$0xff]  ;;  %v199_v32 = vld [vmem:[#allocation5 + $0x338] sm:$0xff]  ;;  %v181_v33 = vld [vmem:[#allocation5 + $0x2a8] sm:$0xff] }
  0x55   :  { %833 = vmatpush3.msra.mxu1 %v129_v62  ;;  %280 = vmatmul.mubr.f32.vlgmr.msra.gmra.mxu0 %v82_v63  ;;  %v165_v34 = vld [vmem:[#allocation5 + $0x228] sm:$0xff]  ;;  %v198_v35 = vld [vmem:[#allocation5 + $0x330] sm:$0xff]  ;;  %v180_v36 = vld [vmem:[#allocation5 + $0x2a0] sm:$0xff] }
  0x56   :  { %834 = vmatprep.subr.mxu1 %v144_v0  ;;  %842 = vmatprep.subr.mxu0 %v191_v1  ;;  %v164_v37 = vld [vmem:[#allocation5 + $0x220] sm:$0xff]  ;;  %v197_v38 = vld [vmem:[#allocation5 + $0x328] sm:$0xff]  ;;  %v179_v39 = vld [vmem:[#allocation5 + $0x298] sm:$0xff] }
  0x57   :  { %835 = vmatpush3.msra.mxu1 %v128_v2  ;;  %354 = vmatprep.mubr.f32.mxu1 %v85_v3  ;;  %v90_v40 = vld [vmem:[#allocation2 + $0x40] sm:$0xff]  ;;  %v163_v41 = vld [vmem:[#allocation5 + $0x218] sm:$0xff]  ;;  %v89_v42 = vld [vmem:[#allocation2 + $0x38] sm:$0xff] }
  0x58   :  { %843 = vmatpush3.msra.mxu0 %v175_v4  ;;  %355 = vmatmul.mubr.f32.vlgmr.msra.gmra.mxu1 %v84_v5  ;;  %v178_v43 = vld [vmem:[#allocation5 + $0x290] sm:$0xff]  ;;  %v196_v44 = vld [vmem:[#allocation5 + $0x320] sm:$0xff]  ;;  %v91_v47 = vld [vmem:[#allocation2 + $0x48] sm:$0xff] }
  0x59   :  { %844 = vmatprep.subr.mxu0 %v190_v6  ;;  %934 = vmatprep.subr.mxu1 %v207_v8  ;;  %v92_v45 = vld [vmem:[#allocation2 + $0x50] sm:$0xff]  ;;  %v162_v46 = vld [vmem:[#allocation5 + $0x210] sm:$0xff]  ;;  %v177_v48 = vld [vmem:[#allocation5 + $0x288] sm:$0xff] }
  0x5a   :  { %845 = vmatpush3.msra.mxu0 %v174_v7  ;;  %935 = vmatpush3.msra.mxu1 %v207_v8  ;;  %v195_v49 = vld [vmem:[#allocation5 + $0x318] sm:$0xff]  ;;  %v161_v50 = vld [vmem:[#allocation5 + $0x208] sm:$0xff]  ;;  %v176_v51 = vld [vmem:[#allocation5 + $0x280] sm:$0xff] }
  0x5b   :  { %846 = vmatprep.subr.mxu0 %v189_v9  ;;  %936 = vmatprep.subr.mxu1 %v206_v11  ;;  %v194_v52 = vld [vmem:[#allocation5 + $0x310] sm:$0xff]  ;;  %v160_v53 = vld [vmem:[#allocation5 + $0x200] sm:$0xff]  ;;  %v87_v54 = vld [vmem:[#allocation2 + $0x28] sm:$0xff] }
  0x5c   :  { %847 = vmatpush3.msra.mxu0 %v173_v10  ;;  %937 = vmatpush3.msra.mxu1 %v206_v11  ;;  %v86_v55 = vld [vmem:[#allocation2 + $0x20] sm:$0xff]  ;;  %v193_v56 = vld [vmem:[#allocation5 + $0x308] sm:$0xff]  ;;  %v192_v58 = vld [vmem:[#allocation5 + $0x300] sm:$0xff] }
  0x5d   :  { %848 = vmatprep.subr.mxu0 %v188_v12  ;;  %938 = vmatprep.subr.mxu1 %v205_v14  ;;  %v94_v57 = vld [vmem:[#allocation2 + $0x60] sm:$0xff]  ;;  %v88_v59 = vld [vmem:[#allocation2 + $0x30] sm:$0xff]  ;;  %v93_v60 = vld [vmem:[#allocation2 + $0x58] sm:$0xff] }
  0x5e   :  { %849 = vmatpush3.msra.mxu0 %v172_v13  ;;  %939 = vmatpush3.msra.mxu1 %v205_v14  ;;  %v95_v61 = vld [vmem:[#allocation2 + $0x68] sm:$0xff]  ;;  %v531_v63 = vld [vmem:[#allocation7 + $0x70] sm:$0xff]  ;;  %v530_v0 = vld [vmem:[#allocation7 + $0x68] sm:$0xff] }
  0x5f   :  { %850 = vmatprep.subr.mxu0 %v187_v15  ;;  %940 = vmatprep.subr.mxu1 %v204_v17  ;;  %v532_v62 = vld [vmem:[#allocation7 + $0x78] sm:$0xff]  ;;  %v529_v1 = vld [vmem:[#allocation7 + $0x60] sm:$0xff]  ;;  %v527_v3 = vld [vmem:[#allocation7 + $0x50] sm:$0xff] }
  0x60   :  { %851 = vmatpush3.msra.mxu0 %v171_v16  ;;  %941 = vmatpush3.msra.mxu1 %v204_v17  ;;  %v528_v2 = vld [vmem:[#allocation7 + $0x58] sm:$0xff]  ;;  %v526_v4 = vld [vmem:[#allocation7 + $0x48] sm:$0xff]  ;;  %v525_v5 = vld [vmem:[#allocation7 + $0x40] sm:$0xff] }
  0x61   :  { %852 = vmatprep.subr.mxu0 %v186_v18  ;;  %942 = vmatprep.subr.mxu1 %v203_v20  ;;  %v524_v6 = vld [vmem:[#allocation7 + $0x38] sm:$0xff]  ;;  %v523_v7 = vld [vmem:[#allocation7 + $0x30] sm:$0xff]  ;;  %v522_v8 = vld [vmem:[#allocation7 + $0x28] sm:$0xff] }
  0x62   :  { %853 = vmatpush3.msra.mxu0 %v170_v19  ;;  %943 = vmatpush3.msra.mxu1 %v203_v20  ;;  %v521_v9 = vld [vmem:[#allocation7 + $0x20] sm:$0xff]  ;;  %v520_v10 = vld [vmem:[#allocation7 + $0x18] sm:$0xff]  ;;  %v519_v11 = vld [vmem:[#allocation7 + $0x10] sm:$0xff] }
  0x63   :  { %854 = vmatprep.subr.mxu0 %v185_v21  ;;  %944 = vmatprep.subr.mxu1 %v202_v23  ;;  %v518_v12 = vld [vmem:[#allocation7 + $0x8] sm:$0xff]  ;;  %v517_v13 = vld [vmem:[#allocation7] sm:$0xff]  ;;  %v632_v14 = vld [vmem:[#allocation8 + $0x78] sm:$0xff] }
  0x64   :  { %855 = vmatpush3.msra.mxu0 %v169_v22  ;;  %945 = vmatpush3.msra.mxu1 %v202_v23  ;;  %v631_v15 = vld [vmem:[#allocation8 + $0x70] sm:$0xff]  ;;  %v630_v16 = vld [vmem:[#allocation8 + $0x68] sm:$0xff]  ;;  %v629_v17 = vld [vmem:[#allocation8 + $0x60] sm:$0xff] }
  0x65   :  { %856 = vmatprep.subr.mxu0 %v184_v24  ;;  %946 = vmatprep.subr.mxu1 %v201_v26  ;;  %v628_v18 = vld [vmem:[#allocation8 + $0x58] sm:$0xff]  ;;  %v627_v19 = vld [vmem:[#allocation8 + $0x50] sm:$0xff]  ;;  %v626_v20 = vld [vmem:[#allocation8 + $0x48] sm:$0xff] }
  0x66   :  { %857 = vmatpush3.msra.mxu0 %v168_v25  ;;  %947 = vmatpush3.msra.mxu1 %v201_v26  ;;  %v625_v21 = vld [vmem:[#allocation8 + $0x40] sm:$0xff]  ;;  %v624_v22 = vld [vmem:[#allocation8 + $0x38] sm:$0xff]  ;;  %v623_v23 = vld [vmem:[#allocation8 + $0x30] sm:$0xff] }
  0x67   :  { %858 = vmatprep.subr.mxu0 %v183_v27  ;;  %948 = vmatprep.subr.mxu1 %v200_v29  ;;  %v622_v24 = vld [vmem:[#allocation8 + $0x28] sm:$0xff]  ;;  %v621_v25 = vld [vmem:[#allocation8 + $0x20] sm:$0xff] }
  0x68   :  { %859 = vmatpush3.msra.mxu0 %v167_v28  ;;  %949 = vmatpush3.msra.mxu1 %v200_v29 }
  0x69   :  { %860 = vmatprep.subr.mxu0 %v182_v30  ;;  %950 = vmatprep.subr.mxu1 %v199_v32 }
  0x6a   :  { %861 = vmatpush3.msra.mxu0 %v166_v31  ;;  %951 = vmatpush3.msra.mxu1 %v199_v32  ;;  %v763_v32 = vld [vmem:[%s1255_s2] ss:$0 sm:$0xff] }
  0x6b   :  { %862 = vmatprep.subr.mxu0 %v181_v33  ;;  %952 = vmatprep.subr.mxu1 %v198_v35 }
  0x6c   :  { %863 = vmatpush3.msra.mxu0 %v165_v34  ;;  %953 = vmatpush3.msra.mxu1 %v198_v35 }
  0x6d   :  { %864 = vmatprep.subr.mxu0 %v180_v36  ;;  %954 = vmatprep.subr.mxu1 %v197_v38 }
  0x6e   :  { %865 = vmatpush3.msra.mxu0 %v164_v37  ;;  %284 = vmatprep.mubr.f32.mxu0 %v90_v40 }
  0x6f   :  { %866 = vmatprep.subr.mxu0 %v179_v39  ;;  %955 = vmatpush3.msra.mxu1 %v197_v38 }
  0x70   :  { %867 = vmatpush3.msra.mxu0 %v163_v41  ;;  %956 = vmatprep.subr.mxu1 %v196_v44 }
  0x71   :  { %285 = vmatmul.mubr.f32.gmra.mxu0 %v89_v42  ;;  %868 = vmatprep.subr.mxu0 %v178_v43 }
  0x72   :  { %359 = vmatprep.mubr.f32.mxu1 %v92_v45  ;;  %869 = vmatpush3.msra.mxu0 %v162_v46 }
  0x73   :  { %957 = vmatpush3.msra.mxu1 %v196_v44  ;;  %870 = vmatprep.subr.mxu0 %v177_v48 }
  0x74   :  { %360 = vmatmul.mubr.f32.gmra.mxu1 %v91_v47  ;;  %958 = vmatprep.subr.mxu1 %v195_v49 }
  0x75   :  { %871 = vmatpush3.msra.mxu0 %v161_v50  ;;  %959 = vmatpush3.msra.mxu1 %v195_v49 }
  0x76   :  { %872 = vmatprep.subr.mxu0 %v176_v51  ;;  %960 = vmatprep.subr.mxu1 %v194_v52 }
  0x77   :  { %873 = vmatpush3.msra.mxu0 %v160_v53  ;;  %429 = vmatprep.mubr.f32.mxu0 %v87_v54 }
  0x78   :  { %961 = vmatpush3.msra.mxu1 %v194_v52  ;;  %430 = vmatmul.mubr.f32.vlgmr.msra.gmra.mxu0 %v86_v55 }
  0x79   :  { %962 = vmatprep.subr.mxu1 %v193_v56  ;;  %434 = vmatprep.mubr.f32.mxu0 %v94_v57  ;;  %v620_v57 = vld [vmem:[#allocation8 + $0x18] sm:$0xff] }
  0x7a   :  { %963 = vmatpush3.msra.mxu1 %v193_v56  ;;  %966 = vmatprep.mubr.f32.mxu1 %v88_v59  ;;  %v618_v59 = vld [vmem:[#allocation8 + $0x8] sm:$0xff] }
  0x7b   :  { %964 = vmatprep.subr.mxu1 %v192_v58  ;;  %969 = vmatprep.subr.mxu0 %v532_v62 }
  0x7c   :  { %965 = vmatpush3.msra.mxu1 %v192_v58  ;;  %435 = vmatmul.mubr.f32.gmra.mxu0 %v93_v60  ;;  %v619_v58 = vld [vmem:[#allocation8 + $0x10] sm:$0xff]  ;;  %v617_v60 = vld [vmem:[#allocation8] sm:$0xff] }
  0x7d   :  { %967 = vmatmul.mubr.f32.vlgmr.msra.gmra.mxu1 %v95_v61  ;;  %970 = vmatpush3.msra.mxu0 %v532_v62  ;;  %v764_v61 = vld [vmem:[%s1257_s4] ss:$0 sm:$0xff]  ;;  %s1172_s4 = smov [#allocation10]  }
  0x7e   :  { %971 = vmatprep.subr.mxu0 %v531_v63  ;;  %1004 = vmatprep.subr.mxu1 %v632_v14 }
  0x7f   :  { %972 = vmatpush3.msra.mxu0 %v531_v63  ;;  %1005 = vmatpush3.msra.mxu1 %v632_v14 }
  0x80   :  { %973 = vmatprep.subr.mxu0 %v530_v0  ;;  %1006 = vmatprep.subr.mxu1 %v631_v15 }
  0x81   :  { %974 = vmatpush3.msra.mxu0 %v530_v0  ;;  %1007 = vmatpush3.msra.mxu1 %v631_v15 }
  0x82   :  { %975 = vmatprep.subr.mxu0 %v529_v1  ;;  %1008 = vmatprep.subr.mxu1 %v630_v16 }
  0x83   :  { %976 = vmatpush3.msra.mxu0 %v529_v1  ;;  %1009 = vmatpush3.msra.mxu1 %v630_v16 }
  0x84   :  { %977 = vmatprep.subr.mxu0 %v528_v2  ;;  %1010 = vmatprep.subr.mxu1 %v629_v17 }
  0x85   :  { %978 = vmatpush3.msra.mxu0 %v528_v2  ;;  %1011 = vmatpush3.msra.mxu1 %v629_v17 }
  0x86   :  { %979 = vmatprep.subr.mxu0 %v527_v3  ;;  %1012 = vmatprep.subr.mxu1 %v628_v18 }
  0x87   :  { %980 = vmatpush3.msra.mxu0 %v527_v3  ;;  %1013 = vmatpush3.msra.mxu1 %v628_v18 }
  0x88   :  { %981 = vmatprep.subr.mxu0 %v526_v4  ;;  %1014 = vmatprep.subr.mxu1 %v627_v19 }
  0x89   :  { %982 = vmatpush3.msra.mxu0 %v526_v4  ;;  %1015 = vmatpush3.msra.mxu1 %v627_v19  ;;  %v715_v4 = vlaneseq }
  0x8a   :  { %983 = vmatprep.subr.mxu0 %v525_v5  ;;  %1016 = vmatprep.subr.mxu1 %v626_v20 }
  0x8b   :  { %984 = vmatpush3.msra.mxu0 %v525_v5  ;;  %1017 = vmatpush3.msra.mxu1 %v626_v20 }
  0x8c   :  { %985 = vmatprep.subr.mxu0 %v524_v6  ;;  %1018 = vmatprep.subr.mxu1 %v625_v21 }
  0x8d   :  { %986 = vmatpush3.msra.mxu0 %v524_v6  ;;  %1019 = vmatpush3.msra.mxu1 %v625_v21  ;;  %v716_v6 = vand.u32 127, %v715_v4 }
  0x8e   :  { %987 = vmatprep.subr.mxu0 %v523_v7  ;;  %1020 = vmatprep.subr.mxu1 %v624_v22 }
  0x8f   :  { %988 = vmatpush3.msra.mxu0 %v523_v7  ;;  %1021 = vmatpush3.msra.mxu1 %v624_v22  ;;  %v765_v7 = vld [vmem:[%s1259_s6] ss:$0 sm:$0xff]  ;;  %vm717_vm0 = vcmp.lt.s32.totalorder %v716_v6, 10  ;;  %s749_s6 = sshll.u32 %s1172_s4, 4  ;;  %s750_s6 = int_to_ptr.vmem [resolvable:$true] %s749_s6 }
  0x90   :  { %989 = vmatprep.subr.mxu0 %v522_v8  ;;  %1022 = vmatprep.subr.mxu1 %v623_v23  ;;  %s1136_s26 = scalar_lea.vmem %s750_s6, 256  ;;  %p1141_p7 = scmp.lt.s32.totalorder %s750_s6, %s750_s6 }
  0x91   :  { %990 = vmatpush3.msra.mxu0 %v522_v8  ;;  %1023 = vmatpush3.msra.mxu1 %v623_v23  ;;  %p1137_p6 = scmp.ne.s32.totalorder %s750_s6, %s1136_s26  ;;  %p1142_p8 = scmp.lt.s32.totalorder %s1136_s26, %s1136_s26 }
  0x92   :  { %991 = vmatprep.subr.mxu0 %v521_v9  ;;  %1024 = vmatprep.subr.mxu1 %v622_v24 }
  0x93   :  { %992 = vmatpush3.msra.mxu0 %v521_v9  ;;  %1025 = vmatpush3.msra.mxu1 %v622_v24  ;;  %p1143_p9 = por %p1142_p8, %p1141_p7 }
  0x94   :  { %993 = vmatprep.subr.mxu0 %v520_v10  ;;  %1026 = vmatprep.subr.mxu1 %v621_v25 }
  0x95   :  { %994 = vmatpush3.msra.mxu0 %v520_v10  ;;  %1027 = vmatpush3.msra.mxu1 %v621_v25  ;;  %p1144_p10 = pnand %p1143_p9, %p1137_p6 }
  0x96   :  { %995 = vmatprep.subr.mxu0 %v519_v11  ;;  %1028 = vmatprep.subr.mxu1 %v620_v57 }
  0x97   :  { %996 = vmatpush3.msra.mxu0 %v519_v11  ;;  %1029 = vmatpush3.msra.mxu1 %v620_v57 }
  0x98   :  { %997 = vmatprep.subr.mxu0 %v518_v12  ;;  %1030 = vmatprep.subr.mxu1 %v619_v58 }
  0x99   :  { %998 = vmatpush3.msra.mxu0 %v518_v12  ;;  %1031 = vmatpush3.msra.mxu1 %v619_v58 }
  0x9a   :  { %999 = vmatprep.subr.mxu0 %v517_v13  ;;  %1032 = vmatprep.subr.mxu1 %v618_v59 }
  0x9b   :  { %1000 = vmatpush3.msra.mxu0 %v517_v13  ;;  %1033 = vmatpush3.msra.mxu1 %v618_v59 }
  0x9c   :  { %1034 = vmatprep.subr.mxu1 %v617_v60 }
  0x9d   :  { %1035 = vmatpush3.msra.mxu1 %v617_v60 }
 0x115   :  { %v798_v26 = vpop.f32.mrf.mxu0 }
 0x117   :  { %v799_v27 = vpop.f32.mrf.mxu0 }
 0x118   :  { %v836_v28 = vpop.f32.mrf.mxu1  ;;  %v800_v31 = vadd.f32 %v799_v27, %v798_v26 }
 0x11a   :  { %v837_v30 = vpop.f32.mrf.mxu1  ;;  %v282_v35 = vadd.f32 %v800_v31, %v763_v32 }
 0x11b   :  { %v838_v36 = vadd.f32 %v837_v30, %v836_v28 }
 0x11d   :  { %v357_v41 = vadd.f32 %v838_v36, %v282_v35 }
 0x131   :  { %v801_v29 = vpop.f32.mrf.mxu0 }
 0x133   :  { %v802_v33 = vpop.f32.mrf.mxu0 }
 0x134   :  { %v839_v34 = vpop.f32.mrf.mxu1  ;;  %v803_v37 = vadd.f32 %v802_v33, %v801_v29 }
 0x136   :  { %v840_v38 = vpop.f32.mrf.mxu1  ;;  %v287_v42 = vadd.f32 %v803_v37, %v763_v32 }
 0x137   :  { %v841_v43 = vadd.f32 %v840_v38, %v839_v34 }
 0x138   :  { %v874_v39 = vpop.f32.mrf.mxu0 }
 0x139   :  { %v362_v50 = vadd.f32 %v841_v43, %v287_v42 }
 0x13a   :  { %v875_v40 = vpop.f32.mrf.mxu0 }
 0x13b   :  { %v876_v44 = vadd.f32 %v875_v40, %v874_v39 }
 0x13c   :  { %v877_v45 = vpop.f32.mrf.mxu0 }
 0x13d   :  { %v968_v46 = vpop.f32.mrf.mxu1  ;;  %v432_v47 = vadd.f32 %v876_v44, %v357_v41 }
 0x13e   :  { %v878_v48 = vpop.f32.mrf.mxu0 }
 0x13f   :  { %v506_v49 = vpop.f32.mrf.mxu1  ;;  %v879_v51 = vadd.f32 %v878_v48, %v877_v45 }
 0x140   :  { %v507_v52 = vadd.f32 %v506_v49, %v432_v47 }
 0x141   :  { %v437_v53 = vadd.f32 %v879_v51, %v362_v50 }
 0x142   :  { %v515_v54 = vmax.f32 %v507_v52, 0.0 }
 0x143   :  { %v512_v55 = vadd.f32 %v968_v46, %v437_v53 }
 0x144   :  { %1001 = vmatprep.mubr.f32.mxu0 %v515_v54 }
 0x145   :  { %v516_v56 = vmax.f32 %v512_v55, 0.0 }
 0x147   :  { %1002 = vmatmul.mubr.f32.vlgmr.msra.gmra.mxu0 %v516_v56 }
 0x207   :  { %v1003_v62 = vpop.f32.mrf.mxu0 }
 0x208   :  { %v612_v63 = vadd.f32 %v1003_v62, %v764_v61 }
 0x209   :  { %v606_v0 = vpop.f32.mrf.mxu0 }
 0x20a   :  { %v607_v1 = vadd.f32 %v764_v61, %v606_v0  ;;  %v616_v3 = vmax.f32 %v612_v63, 0.0 }
 0x20c   :  { %v615_v2 = vmax.f32 %v607_v1, 0.0 }
 0x20e   :  { %1036 = vmatprep.mubr.f32.mxu1 %v615_v2 }
 0x20f   :  { %1037 = vmatmul.mubr.f32.vlgmr.msra.gmra.mxu1 %v616_v3 }
 0x2cf   :  { %v1038_v5 = vpop.f32.mrf.mxu1 }
 0x2d0   :  { %v712_v10 = vadd.f32 %v1038_v5, %v765_v7 }
 0x2d1   :  { %v706_v8 = vpop.f32.mrf.mxu1 }
 0x2d2   :  { %v707_v9 = vadd.f32 %v765_v7, %v706_v8  ;;  %v719_v12 = vsel %vm717_vm0, %v712_v10, -1e+30 }
 0x2d4   :  { %v718_v11 = vsel %vm717_vm0, %v707_v9, -1e+30 }
 0x2d5   :  { %720 = vmax.xlane.f32.xlu0 %v718_v11 }
 0x2d9   :  { %722 = vmax.xlane.f32.xlu0 %v719_v12 }
 0x35e   :  { %v721_v13 = vpop.xlane.xlu0 %720 }
 0x35f   :  { %v724_v14 = vsub.f32 %v718_v11, %v721_v13 }
 0x361   :  { %v726_v15 = vmul.f32 1.442695, %v724_v14 }
 0x362   :  { %v723_v16 = vpop.xlane.xlu0 %722 }
 0x363   :  { %1048 = vpow2.f32 %v726_v15  ;;  %v725_v17 = vsub.f32 %v719_v12, %v723_v16 }
 0x365   :  { %v728_v18 = vmul.f32 1.442695, %v725_v17 }
 0x367   :  { %1050 = vpow2.f32 %v728_v18 }
 0x370   :  { %v1049_v19 = vpop.eup %1048 }
 0x371   :  { %v730_v20 = vsel %vm717_vm0, %v1049_v19, 0.0 }
 0x372   :  { %732 = vadd.xlane.f32.xlu1 %v730_v20 }
 0x374   :  { %v1051_v21 = vpop.eup %1050 }
 0x375   :  { %v731_v22 = vsel %vm717_vm0, %v1051_v21, 0.0 }
 0x376   :  { %734 = vadd.xlane.f32.xlu1 %v731_v22 }
 0x3fb   :  { %v733_v23 = vpop.xlane.xlu1 %732 }
 0x3fc   :  { %1052 = vlog2.f32 %v733_v23 }
 0x3ff   :  { %v735_v24 = vpop.xlane.xlu1 %734 }
 0x400   :  { %1054 = vlog2.f32 %v735_v24 }
 0x409   :  { %v1053_v25 = vpop.eup %1052 }
 0x40a   :  { %v737_v26 = vmul.f32 0.6931472, %v1053_v25 }
 0x40c   :  { %v740_v27 = vsub.f32 %v724_v14, %v737_v26 }
 0x40d   :  { %v1055_v28 = vpop.eup %1054 }
 0x40e   :  { %v739_v29 = vmul.f32 0.6931472, %v1055_v28  ;;  %742 = vst [vmem:[#allocation10] sm:$0xff] %v740_v27 }
 0x410   :  { %v741_v30 = vsub.f32 %v725_v17, %v739_v29 }
 0x412   :  { %743 = vst [vmem:[#allocation10 + $0x8] sm:$0xff] %v741_v30 }
 0x413   :  { %1147 = shalt.err (!%p1144_p10)
}
 0x414   :  { %755 = dma.vmem_to_hbm [thread:$0]  %s750_s6, 256, %s1260_s7, [#allocation4], %s1165_s27, %s1165_s27, %s1166_s28  }
 0x415   :  { %1162 = dma.done.wait [#allocation4], 256  }
 0x416   :  { %1163 = vsyncadd [#allocation4], 4294967040 }
 0x417   :  { %759 = vsyncpa [#allocation3], 1 }
 0x418   :  { %760 = vsyncpa [#allocation6], 1 }
 0x419   :  { %761 = vsyncpa [#allocation9], 1 }
 0x41a   :  { %762 = vsyncpa [#allocation4], 1 }

</bundles_post_ra>
